<compile_context>
chip_gen: v6e
topology: v6e:2x2x1
jax: 0.10.0
libtpu: 0.0.40
codegen_flags: <defaults>
</compile_context>

<pallas_src>
import functools

import jax
import jax.numpy as jnp
from jax.experimental import pallas as pl
from jax.experimental.pallas import tpu as pltpu


def _round_up(n, m):
    return ((n + m - 1) // m) * m


def mdn_kernel(x_ref, w1_ref, b1_ref, w2_ref, b2_ref, w3_ref, b3_ref,
               wh_ref, bh_ref, out_ref, *, n_gaussians):
    g = n_gaussians
    x = x_ref[...]                                                  # (1, T): batch on lanes

    # Layer 1 (in_features = 1): rank-1 outer product -> VPU broadcast FMA, no MXU.
    h = jnp.maximum(w1_ref[...] * x + b1_ref[...], 0.0)            # (H, 1)*(1, T) -> (H, T)

    # Layers 2 & 3: bf16 at the matmul boundary, f32 accumulate, f32 elementwise.
    h = jnp.maximum(
        jnp.dot(w2_ref[...], h.astype(jnp.bfloat16),
                preferred_element_type=jnp.float32) + b2_ref[...], 0.0)
    h = jnp.maximum(
        jnp.dot(w3_ref[...], h.astype(jnp.bfloat16),
                preferred_element_type=jnp.float32) + b3_ref[...], 0.0)

    # Fused heads: single (3G, H) @ (H, T) matmul instead of three 4-wide ones.
    z = jnp.dot(wh_ref[...], h.astype(jnp.bfloat16),
                preferred_element_type=jnp.float32) + bh_ref[...]   # (3G, T)

    logits = z[0:g, :]
    mu = z[g:2 * g, :]
    log_sigma = z[2 * g:3 * g, :]

    # Softmax over the gaussian (sublane) axis; EXACT division so pi sums to 1
    # within f32 rounding (approx reciprocal previously failed the sum check).
    m = jnp.max(logits, axis=0, keepdims=True)
    e = jnp.exp(logits - m)
    pi = e / jnp.sum(e, axis=0, keepdims=True)

    # Assemble the full (3G, T) slab in registers -> one unmasked lane-dense store.
    out_ref[...] = jnp.concatenate([pi, mu, jnp.exp(log_sigma)], axis=0)


def mdn_forward(x, params, *, tile_n=8192):
    """x: (N, 1) float32. Returns (pi, mu, sigma), each (N, n_gaussians) float32."""
    n = x.shape[0]
    n_hidden = params["w2"].shape[0]
    g3 = params["w_heads"].shape[0]
    g = g3 // 3

    # Large lane-aligned batch tile amortizes per-grid-step overhead.
    # v7x: keep tile_n <= ~16384 (64 MiB VMEM) and >= 2 grid steps for megacore.
    tile = min(tile_n, _round_up(max(n, 1), 128))
    num_tiles = pl.cdiv(n, tile)
    n_pad = num_tiles * tile

    # Batch on the lane axis (transposed layout); pad only the tail.
    x_t = x[:, 0].reshape(1, n)
    if n_pad != n:
        x_t = jnp.pad(x_t, ((0, 0), (0, n_pad - n)))

    # bf16 copies of the MXU-stationary weights; biases and layer-1 weight stay f32.
    w2 = params["w2"].astype(jnp.bfloat16)
    w3 = params["w3"].astype(jnp.bfloat16)
    wh = params["w_heads"].astype(jnp.bfloat16)

    const = lambda i: (0, 0)

    out = pl.pallas_call(
        functools.partial(mdn_kernel, n_gaussians=g),
        out_shape=jax.ShapeDtypeStruct((g3, n_pad), jnp.float32),
        grid=(num_tiles,),
        in_specs=[
            pl.BlockSpec((1, tile), lambda i: (0, i)),          # x batch tile
            pl.BlockSpec((n_hidden, 1), const),                 # w1  (H, 1)  f32
            pl.BlockSpec((n_hidden, 1), const),                 # b1  (H, 1)  f32
            pl.BlockSpec((n_hidden, n_hidden), const),          # w2  (H, H)  bf16
            pl.BlockSpec((n_hidden, 1), const),                 # b2          f32
            pl.BlockSpec((n_hidden, n_hidden), const),          # w3          bf16
            pl.BlockSpec((n_hidden, 1), const),                 # b3          f32
            pl.BlockSpec((g3, n_hidden), const),                # fused head weight bf16
            pl.BlockSpec((g3, 1), const),                       # fused head bias   f32
        ],
        out_specs=pl.BlockSpec((g3, tile), lambda i: (0, i)),   # fused lane-dense output
        compiler_params=pltpu.CompilerParams(
            dimension_semantics=("parallel",)),
    )(x_t, params["w1"], params["b1"], w2, params["b2"],
      w3, params["b3"], wh, params["b_heads"])

    # One transpose over the valid columns instead of three per-head transposes.
    out_t = out[:, :n].T                                        # (N, 3G)
    return out_t[:, :g], out_t[:, g:2 * g], out_t[:, 2 * g:]


def init_params(key, n_hidden, n_gaussians):
    """PyTorch-native layout: weights (out, in), biases (out, 1); heads fused to (3G, *)."""
    ks = jax.random.split(key, 12)

    def lin(kw, kb, fan_in, fan_out):
        s = 1.0 / jnp.sqrt(jnp.float32(fan_in))
        w = jax.random.uniform(kw, (fan_out, fan_in), jnp.float32, -s, s)
        b = jax.random.uniform(kb, (fan_out, 1), jnp.float32, -s, s)
        return w, b

    w1, b1 = lin(ks[0], ks[1], 1, n_hidden)
    w2, b2 = lin(ks[2], ks[3], n_hidden, n_hidden)
    w3, b3 = lin(ks[4], ks[5], n_hidden, n_hidden)
    wpi, bpi = lin(ks[6], ks[7], n_hidden, n_gaussians)
    wmu, bmu = lin(ks[8], ks[9], n_hidden, n_gaussians)
    wsg, bsg = lin(ks[10], ks[11], n_hidden, n_gaussians)
    w_heads = jnp.concatenate([wpi, wmu, wsg], axis=0)   # (3G, H)
    b_heads = jnp.concatenate([bpi, bmu, bsg], axis=0)   # (3G, 1)
    return dict(w1=w1, b1=b1, w2=w2, b2=b2, w3=w3, b3=b3,
                w_heads=w_heads, b_heads=b_heads)


def mdn_reference(x, p):
    """Pure-JAX f32 reference of the PyTorch forward for validation."""
    g = p["w_heads"].shape[0] // 3
    h = jax.nn.relu(x @ p["w1"].T + p["b1"].T)
    h = jax.nn.relu(h @ p["w2"].T + p["b2"].T)
    h = jax.nn.relu(h @ p["w3"].T + p["b3"].T)
    z = h @ p["w_heads"].T + p["b_heads"].T
    pi = jax.nn.softmax(z[:, :g], axis=-1)
    mu = z[:, g:2 * g]
    sigma = jnp.exp(z[:, 2 * g:])
    return pi, mu, sigma


if __name__ == "__main__":
    key = jax.random.PRNGKey(0)
    k_x, k_p, k_x2 = jax.random.split(key, 3)

    n_hidden, n_gaussians = 32, 4
    params = init_params(k_p, n_hidden, n_gaussians)

    # Tolerances account for bf16 inputs at the matmul boundary (f32 accumulate).
    TOL = dict(atol=5e-2, rtol=5e-2)

    # Small-shape check (single grid step).
    x = jax.random.normal(k_x, (8, 1), jnp.float32)
    pi, mu, sigma = mdn_forward(x, params)
    jax.block_until_ready((pi, mu, sigma))

    pi_r, mu_r, sigma_r = mdn_reference(x, params)
    assert jnp.allclose(pi, pi_r, **TOL)
    assert jnp.allclose(mu, mu_r, **TOL)
    assert jnp.allclose(sigma, sigma_r, **TOL)
    assert jnp.allclose(jnp.sum(pi, axis=-1), 1.0, atol=1e-3)   # exact softmax normalization

    # Multi-tile check (ragged batch, grid > 1).
    x2 = jax.random.normal(k_x2, (300, 1), jnp.float32)
    pi2, mu2, sigma2 = mdn_forward(x2, params, tile_n=128)
    jax.block_until_ready((pi2, mu2, sigma2))

    pi2_r, mu2_r, sigma2_r = mdn_reference(x2, params)
    assert jnp.allclose(pi2, pi2_r, **TOL)
    assert jnp.allclose(mu2, mu2_r, **TOL)
    assert jnp.allclose(sigma2, sigma2_r, **TOL)
    assert jnp.allclose(jnp.sum(pi2, axis=-1), 1.0, atol=1e-3)

    print("KERNEL_OK")
</pallas_src>

<mosaic_0001>
module attributes {stable_mosaic.version = 11 : i64} {
  func.func @mdn_kernel(%arg0: i32, %arg1: memref<1x128xf32, #tpu.memory_space<vmem>>, %arg2: memref<32x1xf32, #tpu.memory_space<vmem>>, %arg3: memref<32x1xf32, #tpu.memory_space<vmem>>, %arg4: memref<32x32xbf16, #tpu.memory_space<vmem>>, %arg5: memref<32x1xf32, #tpu.memory_space<vmem>>, %arg6: memref<32x32xbf16, #tpu.memory_space<vmem>>, %arg7: memref<32x1xf32, #tpu.memory_space<vmem>>, %arg8: memref<12x32xbf16, #tpu.memory_space<vmem>>, %arg9: memref<12x1xf32, #tpu.memory_space<vmem>>, %arg10: memref<12x128xf32, #tpu.memory_space<vmem>>) attributes {dimension_semantics = [#tpu.dimension_semantics<parallel>], iteration_bounds = array<i64: 1>, scalar_prefetch = 0 : i64, scratch_operands = 0 : i64, tpu.core_type = #tpu.core_type<tc>, window_params = [{transform_indices = @transform_0, window_bounds = array<i64: 1, 128>}, {pipeline_mode = #tpu.pipeline_mode<synchronous>, transform_indices = @transform_1, window_bounds = array<i64: 32, 1>}, {pipeline_mode = #tpu.pipeline_mode<synchronous>, transform_indices = @transform_2, window_bounds = array<i64: 32, 1>}, {pipeline_mode = #tpu.pipeline_mode<synchronous>, transform_indices = @transform_3, window_bounds = array<i64: 32, 32>}, {pipeline_mode = #tpu.pipeline_mode<synchronous>, transform_indices = @transform_4, window_bounds = array<i64: 32, 1>}, {pipeline_mode = #tpu.pipeline_mode<synchronous>, transform_indices = @transform_5, window_bounds = array<i64: 32, 32>}, {pipeline_mode = #tpu.pipeline_mode<synchronous>, transform_indices = @transform_6, window_bounds = array<i64: 32, 1>}, {pipeline_mode = #tpu.pipeline_mode<synchronous>, transform_indices = @transform_7, window_bounds = array<i64: 12, 32>}, {pipeline_mode = #tpu.pipeline_mode<synchronous>, transform_indices = @transform_8, window_bounds = array<i64: 12, 1>}, {transform_indices = @transform_9, window_bounds = array<i64: 12, 128>}]} {
    %c0 = arith.constant 0 : index
    %c0_0 = arith.constant 0 : index
    %0 = vector.load %arg1[%c0, %c0_0] : memref<1x128xf32, #tpu.memory_space<vmem>>, vector<1x128xf32>
    %c0_1 = arith.constant 0 : index
    %c0_2 = arith.constant 0 : index
    %1 = vector.load %arg2[%c0_1, %c0_2] : memref<32x1xf32, #tpu.memory_space<vmem>>, vector<32x1xf32>
    %2 = vector.broadcast %1 : vector<32x1xf32> to vector<32x128xf32>
    %3 = vector.broadcast %0 : vector<1x128xf32> to vector<32x128xf32>
    %4 = arith.mulf %2, %3 : vector<32x128xf32>
    %c0_3 = arith.constant 0 : index
    %c0_4 = arith.constant 0 : index
    %5 = vector.load %arg3[%c0_3, %c0_4] : memref<32x1xf32, #tpu.memory_space<vmem>>, vector<32x1xf32>
    %6 = vector.broadcast %5 : vector<32x1xf32> to vector<32x128xf32>
    %7 = arith.addf %4, %6 : vector<32x128xf32>
    %cst = arith.constant 0.000000e+00 : f32
    %8 = vector.broadcast %cst : f32 to vector<32x128xf32>
    %9 = arith.maximumf %7, %8 : vector<32x128xf32>
    %c0_5 = arith.constant 0 : index
    %c0_6 = arith.constant 0 : index
    %10 = vector.load %arg4[%c0_5, %c0_6] : memref<32x32xbf16, #tpu.memory_space<vmem>>, vector<32x32xbf16>
    %11 = arith.truncf %9 : vector<32x128xf32> to vector<32x128xbf16>
    %cst_7 = arith.constant dense<0.000000e+00> : vector<32x128xf32>
    %12 = tpu.matmul %10, %11, %cst_7 {dimension_numbers = #tpu.dot_dimension_numbers<[1], [0], [0], [1], [0, 0, 1, 1], [], []>} : vector<32x32xbf16>, vector<32x128xbf16>, vector<32x128xf32> -> vector<32x128xf32>
    %c0_8 = arith.constant 0 : index
    %c0_9 = arith.constant 0 : index
    %13 = vector.load %arg5[%c0_8, %c0_9] : memref<32x1xf32, #tpu.memory_space<vmem>>, vector<32x1xf32>
    %14 = vector.broadcast %13 : vector<32x1xf32> to vector<32x128xf32>
    %15 = arith.addf %12, %14 : vector<32x128xf32>
    %cst_10 = arith.constant 0.000000e+00 : f32
    %16 = vector.broadcast %cst_10 : f32 to vector<32x128xf32>
    %17 = arith.maximumf %15, %16 : vector<32x128xf32>
    %c0_11 = arith.constant 0 : index
    %c0_12 = arith.constant 0 : index
    %18 = vector.load %arg6[%c0_11, %c0_12] : memref<32x32xbf16, #tpu.memory_space<vmem>>, vector<32x32xbf16>
    %19 = arith.truncf %17 : vector<32x128xf32> to vector<32x128xbf16>
    %cst_13 = arith.constant dense<0.000000e+00> : vector<32x128xf32>
    %20 = tpu.matmul %18, %19, %cst_13 {dimension_numbers = #tpu.dot_dimension_numbers<[1], [0], [0], [1], [0, 0, 1, 1], [], []>} : vector<32x32xbf16>, vector<32x128xbf16>, vector<32x128xf32> -> vector<32x128xf32>
    %c0_14 = arith.constant 0 : index
    %c0_15 = arith.constant 0 : index
    %21 = vector.load %arg7[%c0_14, %c0_15] : memref<32x1xf32, #tpu.memory_space<vmem>>, vector<32x1xf32>
    %22 = vector.broadcast %21 : vector<32x1xf32> to vector<32x128xf32>
    %23 = arith.addf %20, %22 : vector<32x128xf32>
    %cst_16 = arith.constant 0.000000e+00 : f32
    %24 = vector.broadcast %cst_16 : f32 to vector<32x128xf32>
    %25 = arith.maximumf %23, %24 : vector<32x128xf32>
    %c0_17 = arith.constant 0 : index
    %c0_18 = arith.constant 0 : index
    %26 = vector.load %arg8[%c0_17, %c0_18] : memref<12x32xbf16, #tpu.memory_space<vmem>>, vector<12x32xbf16>
    %27 = arith.truncf %25 : vector<32x128xf32> to vector<32x128xbf16>
    %cst_19 = arith.constant dense<0.000000e+00> : vector<12x128xf32>
    %28 = tpu.matmul %26, %27, %cst_19 {dimension_numbers = #tpu.dot_dimension_numbers<[1], [0], [0], [1], [0, 0, 1, 1], [], []>} : vector<12x32xbf16>, vector<32x128xbf16>, vector<12x128xf32> -> vector<12x128xf32>
    %c0_20 = arith.constant 0 : index
    %c0_21 = arith.constant 0 : index
    %29 = vector.load %arg9[%c0_20, %c0_21] : memref<12x1xf32, #tpu.memory_space<vmem>>, vector<12x1xf32>
    %30 = vector.broadcast %29 : vector<12x1xf32> to vector<12x128xf32>
    %31 = arith.addf %28, %30 : vector<12x128xf32>
    %32 = vector.extract_strided_slice %31 {offsets = [0, 0], sizes = [4, 128], strides = [1, 1]} : vector<12x128xf32> to vector<4x128xf32>
    %33 = vector.extract_strided_slice %31 {offsets = [4, 0], sizes = [4, 128], strides = [1, 1]} : vector<12x128xf32> to vector<4x128xf32>
    %34 = vector.extract_strided_slice %31 {offsets = [8, 0], sizes = [4, 128], strides = [1, 1]} : vector<12x128xf32> to vector<4x128xf32>
    %cst_22 = arith.constant dense<0xFF800000> : vector<128xf32>
    %35 = vector.multi_reduction <maximumf>, %32, %cst_22 [0] : vector<4x128xf32> to vector<128xf32>
    %36 = vector.shape_cast %35 : vector<128xf32> to vector<1x128xf32>
    %37 = vector.broadcast %36 : vector<1x128xf32> to vector<4x128xf32>
    %38 = arith.subf %32, %37 : vector<4x128xf32>
    %39 = math.exp %38 : vector<4x128xf32>
    %cst_23 = arith.constant dense<0.000000e+00> : vector<128xf32>
    %40 = vector.multi_reduction <add>, %39, %cst_23 [0] : vector<4x128xf32> to vector<128xf32>
    %41 = vector.shape_cast %40 : vector<128xf32> to vector<1x128xf32>
    %42 = vector.broadcast %41 : vector<1x128xf32> to vector<4x128xf32>
    %43 = arith.divf %39, %42 : vector<4x128xf32>
    %44 = math.exp %34 : vector<4x128xf32>
    %45 = tpu.concatenate %43, %33, %44 in 0 : vector<4x128xf32>, vector<4x128xf32>, vector<4x128xf32> -> vector<12x128xf32>
    %c0_24 = arith.constant 0 : index
    %c0_25 = arith.constant 0 : index
    %46 = vector.load %arg10[%c0_24, %c0_25] : memref<12x128xf32, #tpu.memory_space<vmem>>, vector<12x128xf32>
    tpu.vector_store %arg10[%c0_24, %c0_25], %45 {strides = array<i32>} : memref<12x128xf32, #tpu.memory_space<vmem>>, vector<12x128xf32>,
    return
  }
  func.func @transform_0(%arg0: i32) -> (i32, i32) {
    %c0_i32 = arith.constant 0 : i32
    %c0_i32_0 = arith.constant 0 : i32
    return %c0_i32, %arg0 : i32, i32
  }
  func.func @transform_1(%arg0: i32) -> (i32, i32) {
    %c0_i32 = arith.constant 0 : i32
    %c0_i32_0 = arith.constant 0 : i32
    %c0_i32_1 = arith.constant 0 : i32
    return %c0_i32, %c0_i32_0 : i32, i32
  }
  func.func @transform_2(%arg0: i32) -> (i32, i32) {
    %c0_i32 = arith.constant 0 : i32
    %c0_i32_0 = arith.constant 0 : i32
    %c0_i32_1 = arith.constant 0 : i32
    return %c0_i32, %c0_i32_0 : i32, i32
  }
  func.func @transform_3(%arg0: i32) -> (i32, i32) {
    %c0_i32 = arith.constant 0 : i32
    %c0_i32_0 = arith.constant 0 : i32
    %c0_i32_1 = arith.constant 0 : i32
    return %c0_i32, %c0_i32_0 : i32, i32
  }
  func.func @transform_4(%arg0: i32) -> (i32, i32) {
    %c0_i32 = arith.constant 0 : i32
    %c0_i32_0 = arith.constant 0 : i32
    %c0_i32_1 = arith.constant 0 : i32
    return %c0_i32, %c0_i32_0 : i32, i32
  }
  func.func @transform_5(%arg0: i32) -> (i32, i32) {
    %c0_i32 = arith.constant 0 : i32
    %c0_i32_0 = arith.constant 0 : i32
    %c0_i32_1 = arith.constant 0 : i32
    return %c0_i32, %c0_i32_0 : i32, i32
  }
  func.func @transform_6(%arg0: i32) -> (i32, i32) {
    %c0_i32 = arith.constant 0 : i32
    %c0_i32_0 = arith.constant 0 : i32
    %c0_i32_1 = arith.constant 0 : i32
    return %c0_i32, %c0_i32_0 : i32, i32
  }
  func.func @transform_7(%arg0: i32) -> (i32, i32) {
    %c0_i32 = arith.constant 0 : i32
    %c0_i32_0 = arith.constant 0 : i32
    %c0_i32_1 = arith.constant 0 : i32
    return %c0_i32, %c0_i32_0 : i32, i32
  }
  func.func @transform_8(%arg0: i32) -> (i32, i32) {
    %c0_i32 = arith.constant 0 : i32
    %c0_i32_0 = arith.constant 0 : i32
    %c0_i32_1 = arith.constant 0 : i32
    return %c0_i32, %c0_i32_0 : i32, i32
  }
  func.func @transform_9(%arg0: i32) -> (i32, i32) {
    %c0_i32 = arith.constant 0 : i32
    %c0_i32_0 = arith.constant 0 : i32
    return %c0_i32, %arg0 : i32, i32
  }
}

</mosaic_0001>

<bundles_post_ra>
// kernel: tpu_custom_call.1
= control target key start
LH: loop header
LB: loop body
LE: loop exit
PB: predicated region body
PF: predicated region fallthrough
CT: control target
= control target key end

     0   :  { %v493_v2 = vmov 0   ;;  %s632_s0 = inlined_call_operand.vmem [shape: f32[1,128], index: 0, kind: input, shape index: {}]   ;;  %s633_s1 = inlined_call_operand.vmem [shape: f32[32,1], index: 1, kind: input, shape index: {}]   ;;  %s634_s2 = inlined_call_operand.vmem [shape: f32[32,1], index: 2, kind: input, shape index: {}]   ;;  %s635_s3 = inlined_call_operand.vmem [shape: bf16[32,32], index: 3, kind: input, shape index: {}]   ;;  %s636_s4 = inlined_call_operand.vmem [shape: f32[32,1], index: 4, kind: input, shape index: {}]   ;;  %s637_s5 = inlined_call_operand.vmem [shape: bf16[32,32], index: 5, kind: input, shape index: {}]   ;;  %s638_s6 = inlined_call_operand.vmem [shape: f32[32,1], index: 6, kind: input, shape index: {}]   ;;  %s639_s7 = inlined_call_operand.vmem [shape: bf16[12,32], index: 7, kind: input, shape index: {}]   ;;  %s640_s8 = inlined_call_operand.vmem [shape: f32[12,1], index: 8, kind: input, shape index: {}]   ;;  %s641_s9 = inlined_call_operand.hbm [shape: f32[12,128], index: 9, kind: output, shape index: {}]  }
   0x1   :  { %v71_v0 = vld [vmem:[%s634_s2 + $0x10] sm:$0xff]  ;;  %459 = vset.pattern.permute.xlu1 %v493_v2  ;;  %458 = vset.pattern.permute.xlu0 %v493_v2  ;;  %v72_v3 = vld [vmem:[%s634_s2 + $0x18] sm:$0xff]  ;;  %v36_v5 = vld [vmem:[%s633_s1 + $0x8] sm:$0xff] }
   0x2   :  { %v37_v1 = vld [vmem:[%s633_s1 + $0x10] sm:$0xff]  ;;  %85 = vperm.xlu1 %459, %v71_v0   ;;  %v38_v4 = vld [vmem:[%s633_s1 + $0x18] sm:$0xff]  ;;  %v35_v6 = vld [vmem:[%s633_s1] sm:$0xff] }
   0x3   :  { %51 = vperm.xlu0 %458, %v37_v1  }
   0x6   :  { %90 = vperm.xlu1 %459, %v72_v3  }
   0x7   :  { %56 = vperm.xlu0 %458, %v38_v4  }
   0x8   :  { %14 = vsyncpa [#allocation3], 0  ;;  %v70_v7 = vld [vmem:[%s634_s2 + $0x8] sm:$0xff]  ;;  %v69_v8 = vld [vmem:[%s634_s2] sm:$0xff]  ;;  %vm141_vm0 = vcmask 261120   ;;  %v494_v0 = vmov 0.0  }
   0x9   :  { %v110_v9 = vld [vmem:[%s636_s4 + $0x18] sm:$0xff]  ;;  %v109_v10 = vld [vmem:[%s636_s4 + $0x10] sm:$0xff]  ;;  %v460_v11 = vld [vmem:[%s635_s3] sm:$0xff]   ;;  %vm495_vm1 = vmmov 0   ;;  %vm365_vm2 = vcmask 1043456  }
   0xa   :  { %46 = vperm.xlu1 %459, %v36_v5   ;;  %v108_v12 = vld [vmem:[%s636_s4 + $0x8] sm:$0xff]  ;;  %v107_v13 = vld [vmem:[%s636_s4] sm:$0xff]  ;;  %432 = vmatprep.mubr.msk.bf16.mxu0 %vm141_vm0, %v460_v11  ;;  %v210_v14 = vld [vmem:[%s638_s6 + $0x18] sm:$0xff] }
   0xb   :  { %41 = vperm.xlu0 %458, %v35_v6   ;;  %v209_v15 = vld [vmem:[%s638_s6 + $0x10] sm:$0xff]  ;;  %v208_v16 = vld [vmem:[%s638_s6 + $0x8] sm:$0xff]  ;;  %v207_v17 = vld [vmem:[%s638_s6] sm:$0xff] }
   0xc   :  { %v305_v18 = vld [vmem:[%s640_s8 + $0x8] sm:$0xf]  ;;  %v304_v19 = vld [vmem:[%s640_s8] sm:$0xff] }
   0xd   :  { %v406_v20 = vld [vmem:[%s632_s0] ss:$0 sm:$0xff]  ;;  %v461_v43 = vld [vmem:[%s635_s3 + $0x8] sm:$0xff]  }
   0xe   :  { %80 = vperm.xlu1 %459, %v70_v7   ;;  %v462_v44 = vld [vmem:[%s637_s5] sm:$0xff]   ;;  %v463_v63 = vld [vmem:[%s637_s5 + $0x8] sm:$0xff]  }
   0xf   :  { %75 = vperm.xlu0 %458, %v69_v8   ;;  %440 = vmatprep.mubr.msk.bf16.mxu1 %vm141_vm0, %v462_v44 }
  0x12   :  { %128 = vperm.xlu1 %459, %v110_v9  }
  0x13   :  { %123 = vperm.xlu0 %458, %v109_v10  }
  0x16   :  { %118 = vperm.xlu1 %459, %v108_v12  }
  0x17   :  { %113 = vperm.xlu0 %458, %v107_v13  }
  0x1a   :  { %228 = vperm.xlu1 %459, %v210_v14  }
  0x1b   :  { %223 = vperm.xlu0 %458, %v209_v15  }
  0x1e   :  { %218 = vperm.xlu1 %459, %v208_v16  }
  0x1f   :  { %213 = vperm.xlu0 %458, %v207_v17  }
  0x22   :  { %313 = vperm.xlu1 %459, %v305_v18  }
  0x23   :  { %308 = vperm.xlu0 %458, %v304_v19   ;;  %v464_v19 = vld [vmem:[%s639_s7] sm:$0x3f]   ;;  %s496_s7 = smov [#allocation2]  }
  0x24   :  { %s395_s28 = sshll.u32 %s496_s7, 4  ;;  %s396_s28 = int_to_ptr.vmem [resolvable:$true] %s395_s28 }
  0x25   :  { %s471_s1 = scalar_lea.vmem %s396_s28, 256  ;;  %p476_p1 = scmp.lt.s32.totalorder %s396_s28, %s396_s28 }
  0x26   :  { %p472_p0 = scmp.ne.s32.totalorder %s396_s28, %s471_s1  ;;  %p477_p2 = scmp.lt.s32.totalorder %s471_s1, %s471_s1 }
  0x28   :  { %p478_p3 = por %p477_p2, %p476_p1 }
  0x2a   :  { %p479_p4 = pnand %p478_p3, %p472_p0 }
  0x7d   :  { %v86_v21 = vpop.permute.xlu1 %85 }
  0x7e   :  { %v52_v22 = vpop.permute.xlu0 %51 }
  0x7f   :  { %v67_v23 = vmul.f32 %v406_v20, %v52_v22 }
  0x81   :  { %v91_v24 = vpop.permute.xlu1 %90  ;;  %v95_v26 = vadd.f32 %v86_v21, %v67_v23 }
  0x82   :  { %v57_v25 = vpop.permute.xlu0 %56 }
  0x83   :  { %v68_v27 = vmul.f32 %v406_v20, %v57_v25  ;;  %v99_v31 = vmax.f32 %v95_v26, 0.0 }
  0x85   :  { %v96_v28 = vadd.f32 %v91_v24, %v68_v27  ;;  %v47_v29 = vpop.permute.xlu1 %46 }
  0x86   :  { %v42_v30 = vpop.permute.xlu0 %41  ;;  %v66_v33 = vmul.f32 %v406_v20, %v47_v29 }
  0x87   :  { %v100_v32 = vmax.f32 %v96_v28, 0.0  ;;  %v65_v34 = vmul.f32 %v406_v20, %v42_v30 }
  0x89   :  { %v106_v35 = vpack.c.bf16 %v100_v32, %v99_v31  ;;  %v81_v36 = vpop.permute.xlu1 %80 }
  0x8a   :  { %v76_v37 = vpop.permute.xlu0 %75  ;;  %v94_v38 = vadd.f32 %v81_v36, %v66_v33 }
  0x8b   :  { %v93_v39 = vadd.f32 %v76_v37, %v65_v34  ;;  %428 = vmatprep.subr.bf16.mxu0 %v106_v35 }
  0x8c   :  { %429 = vmatpush3.bf16.msra.mxu0 %v106_v35  ;;  %v98_v40 = vmax.f32 %v94_v38, 0.0 }
  0x8d   :  { %v97_v41 = vmax.f32 %v93_v39, 0.0  ;;  %v129_v46 = vpop.permute.xlu1 %128 }
  0x8e   :  { %v124_v45 = vpop.permute.xlu0 %123 }
  0x8f   :  { %v105_v42 = vpack.c.bf16 %v98_v40, %v97_v41 }
  0x91   :  { %430 = vmatprep.subr.bf16.mxu0 %v105_v42  ;;  %v119_v54 = vpop.permute.xlu1 %118 }
  0x92   :  { %431 = vmatpush3.bf16.msra.mxu0 %v105_v42  ;;  %v114_v50 = vpop.permute.xlu0 %113 }
  0x93   :  { %444 = vmatprep.subr.bf16.mxu0 %v494_v0 }
  0x95   :  { %433 = vmatmul.mubr.msk.bf16.vlgmr.msra.gmra.mxu0 %vm141_vm0, %v461_v43  ;;  %v229_v1 = vpop.permute.xlu1 %228 }
  0x96   :  { %448 = vmatprep.mubr.msk.bf16.mxu0 %vm495_vm1, %v494_v0  ;;  %v224_v2 = vpop.permute.xlu0 %223 }
  0x99   :  { %v219_v7 = vpop.permute.xlu1 %218 }
  0x9a   :  { %v214_v9 = vpop.permute.xlu0 %213 }
  0x9d   :  { %v314_v25 = vpop.permute.xlu1 %313 }
  0x9e   :  { %v309_v20 = vpop.permute.xlu0 %308 }
 0x155   :  { %v434_v47 = vpop.f32.mrf.mxu0 }
 0x156   :  { %v191_v49 = vadd.f32 %v434_v47, %v124_v45 }
 0x157   :  { %v182_v48 = vpop.f32.mrf.mxu0 }
 0x158   :  { %v183_v52 = vadd.f32 %v182_v48, %v114_v50  ;;  %v199_v56 = vmax.f32 %v191_v49, 0.0 }
 0x159   :  { %v435_v51 = vpop.f32.mrf.mxu0 }
 0x15a   :  { %v194_v53 = vadd.f32 %v435_v51, %v129_v46  ;;  %v197_v59 = vmax.f32 %v183_v52, 0.0 }
 0x15b   :  { %v185_v55 = vpop.f32.mrf.mxu0 }
 0x15c   :  { %v200_v57 = vmax.f32 %v194_v53, 0.0  ;;  %v186_v58 = vadd.f32 %v185_v55, %v119_v54 }
 0x15e   :  { %v198_v60 = vmax.f32 %v186_v58, 0.0  ;;  %v206_v61 = vpack.c.bf16 %v200_v57, %v199_v56 }
 0x160   :  { %v205_v62 = vpack.c.bf16 %v198_v60, %v197_v59  ;;  %436 = vmatprep.subr.bf16.mxu1 %v206_v61 }
 0x161   :  { %437 = vmatpush3.bf16.msra.mxu1 %v206_v61 }
 0x162   :  { %438 = vmatprep.subr.bf16.mxu1 %v205_v62 }
 0x165   :  { %439 = vmatpush3.bf16.msra.mxu1 %v205_v62 }
 0x168   :  { %441 = vmatmul.mubr.msk.bf16.vlgmr.msra.gmra.mxu1 %vm141_vm0, %v463_v63 }
 0x228   :  { %v442_v3 = vpop.f32.mrf.mxu1 }
 0x229   :  { %v290_v5 = vadd.f32 %v442_v3, %v224_v2 }
 0x22a   :  { %v281_v4 = vpop.f32.mrf.mxu1 }
 0x22b   :  { %v298_v11 = vmax.f32 %v290_v5, 0.0  ;;  %v282_v12 = vadd.f32 %v281_v4, %v214_v9 }
 0x22c   :  { %v443_v6 = vpop.f32.mrf.mxu1 }
 0x22d   :  { %v293_v8 = vadd.f32 %v443_v6, %v229_v1  ;;  %v296_v17 = vmax.f32 %v282_v12, 0.0 }
 0x22e   :  { %v284_v10 = vpop.f32.mrf.mxu1 }
 0x22f   :  { %v299_v13 = vmax.f32 %v293_v8, 0.0  ;;  %v285_v14 = vadd.f32 %v284_v10, %v219_v7 }
 0x231   :  { %v303_v15 = vpack.c.bf16 %v299_v13, %v298_v11  ;;  %v297_v16 = vmax.f32 %v285_v14, 0.0 }
 0x233   :  { %445 = vmatpush3.bf16.msra.mxu0 %v303_v15  ;;  %v302_v18 = vpack.c.bf16 %v297_v16, %v296_v17 }
 0x234   :  { %446 = vmatprep.subr.bf16.mxu0 %v494_v0 }
 0x237   :  { %447 = vmatpush3.bf16.msra.mxu0 %v302_v18 }
 0x23a   :  { %449 = vmatmul.mubr.msk.bf16.vlgmr.msra.gmra.mxu0 %vm141_vm0, %v464_v19 }
 0x2fa   :  { %v358_v21 = vpop.f32.mrf.mxu0 }
 0x2fb   :  { %v359_v22 = vadd.f32 %v358_v21, %v309_v20 }
 0x2fc   :  { %v450_v23 = vpop.f32.mrf.mxu0 }
 0x2fd   :  { %v366_v24 = vsel %vm365_vm2, %v359_v22, -inf }
 0x2fe   :  { %v367_v26 = vrot.slane %v366_v24, 4  ;;  %v361_v27 = vpop.f32.mrf.mxu0 }
 0x2ff   :  { %v362_v28 = vadd.f32 %v361_v27, %v314_v25 }
 0x300   :  { %v368_v29 = vmax.f32 %v366_v24, %v367_v26  ;;  %v451_v30 = vpop.f32.mrf.mxu0 }
 0x301   :  { %v385_v31 = vmul.f32 1.442695, %v362_v28 }
 0x302   :  { %v369_v32 = vrot.slane %v368_v29, 2 }
 0x303   :  { %465 = vpow2.f32 %v385_v31 }
 0x304   :  { %v370_v33 = vmax.f32 %v368_v29, %v369_v32 }
 0x306   :  { %v371_v34 = vrot.slane %v370_v33, 1 }
 0x308   :  { %v372_v35 = vmax.f32 %v370_v33, %v371_v34 }
 0x30a   :  { %v373_v36 = vsub.f32 %v359_v22, %v372_v35 }
 0x30c   :  { %v374_v37 = vmul.f32 1.442695, %v373_v36 }
 0x30e   :  { %467 = vpow2.f32 %v374_v37 }
 0x310   :  { %v466_v38 = vpop.eup %465 }
 0x311   :  { %389 = vst [vmem:[#allocation2 + $0x8] sm:$0xf] %v466_v38 }
 0x31b   :  { %v468_v39 = vpop.eup %467 }
 0x31c   :  { %v376_v40 = vsel %vm365_vm2, %v468_v39, 0.0 }
 0x31d   :  { %v377_v41 = vrot.slane %v376_v40, 4 }
 0x31f   :  { %v378_v42 = vadd.f32 %v377_v41, %v376_v40 }
 0x321   :  { %v379_v43 = vrot.slane %v378_v42, 2 }
 0x323   :  { %v380_v44 = vadd.f32 %v379_v43, %v378_v42 }
 0x325   :  { %v381_v45 = vrot.slane %v380_v44, 1 }
 0x327   :  { %v382_v46 = vadd.f32 %v381_v45, %v380_v44 }
 0x329   :  { %469 = vrcp.f32 %v382_v46 }
 0x336   :  { %v470_v47 = vpop.eup %469 }
 0x337   :  { %v384_v48 = vmul.f32 %v470_v47, %v468_v39 }
 0x339   :  { %v387_v49 = vsel %vm365_vm2, %v384_v48, %v359_v22 }
 0x33a   :  { %388 = vst [vmem:[#allocation2] sm:$0xff] %v387_v49 }
 0x33b   :  { %482 = shalt.err (!%p479_p4)
}
 0x33c   :  { %s497_s29 = smov 128   ;;  %s498_s30 = smov 8  }
 0x33d   :  { %401 = dma.vmem_to_hbm [thread:$0]  %s396_s28, 256, %s641_s9, [#allocation3], %s497_s29, %s497_s29, %s498_s30  }
 0x33e   :  { %491 = dma.done.wait [#allocation3], 256  }
 0x33f   :  { %492 = vsyncadd [#allocation3], 4294967040 }
 0x340   :  { %405 = vsyncpa [#allocation3], 1 }

</bundles_post_ra>
